<compile_context>
chip_gen: v7x
topology: tpu7x:2x2x1
jax: 0.10.0
libtpu: 0.0.40
codegen_flags: <defaults>
</compile_context>

<pallas_src>
import jax
import jax.numpy as jnp
from jax import lax
from jax.experimental import pallas as pl
from jax.experimental.pallas import tpu as pltpu

# ----- config (mirrors the PyTorch script) -----
n_embd = 32
block_size = 8
num_heads = 4
head_size = n_embd // num_heads
# NOTE: the PyTorch Head scales by C**-0.5 with C = x.shape[-1] = n_embd,
# NOT head_size**-0.5.  Kept intentionally to match the reference module.
ATTN_SCALE = float(n_embd) ** -0.5
LANE = 128   # lane-dense padded width for the output projection / HBM store


def mha_kernel(x_ref, wqkv_ref, wproj_ref, bproj_ref, o_ref):
    """Causal multi-head attention for the whole (B, T, C) batch in one shot.

    x_ref    : (B, T, C)          f32
    wqkv_ref : (C, 3*C)           f32   columns = [Wq | Wk | Wv]
    wproj_ref: (H, hs, LANE)      f32   output projection, zero-padded C->LANE
    bproj_ref: (1, LANE)          f32   zero-padded bias
    o_ref    : (B, T, LANE)       f32   lane-dense; caller slices [..., :C]
    """
    B, T, C = x_ref.shape
    CP = o_ref.shape[-1]
    hs = head_size

    # Fused QKV projection on the flattened batch: one (B*T, C) @ (C, 3C) matmul.
    x2d = x_ref[...].reshape(B * T, C)
    qkv = jnp.dot(x2d, wqkv_ref[...], preferred_element_type=jnp.float32)  # (B*T, 3C)

    # Causal mask, hoisted out of the head loop (built once).
    row = lax.broadcasted_iota(jnp.int32, (T, T), 0)
    col = lax.broadcasted_iota(jnp.int32, (T, T), 1)
    causal = (col <= row)[None, :, :]                                      # (1, T, T)

    acc = jnp.zeros((B * T, CP), jnp.float32)
    for h in range(num_heads):                       # statically unrolled (4 heads)
        lo = h * hs
        q = qkv[:, 0 * C + lo:0 * C + lo + hs].reshape(B, T, hs)
        k = qkv[:, 1 * C + lo:1 * C + lo + hs].reshape(B, T, hs)
        v = qkv[:, 2 * C + lo:2 * C + lo + hs].reshape(B, T, hs)

        # Batched over B (single-batch-dim einsum == TPU batched matmul).
        s = jnp.einsum('btd,bsd->bts', q, k,
                       preferred_element_type=jnp.float32) * ATTN_SCALE    # (B, T, T)
        s = jnp.where(causal, s, -jnp.inf)
        s = s - jnp.max(s, axis=-1, keepdims=True)
        p = jnp.exp(s)
        p = p * pl.reciprocal(jnp.sum(p, axis=-1, keepdims=True), approx=True)
        # TODO(synk): train-mode attention dropout (p=0.2) not implemented;
        # eval-mode dropout is identity.
        av = jnp.einsum('bts,bsd->btd', p, v,
                        preferred_element_type=jnp.float32)                # (B, T, hs)

        # Fold the head output straight into the output projection
        # (no lane concatenate):  acc += head_h @ Wproj[h*hs:(h+1)*hs, :].
        acc = acc + jnp.dot(av.reshape(B * T, hs), wproj_ref[h],
                            preferred_element_type=jnp.float32)            # (B*T, CP)

    o_ref[...] = (acc + bproj_ref[...]).reshape(B, T, CP)


def fuse_mha_params(wq, wk, wv, wproj, bproj):
    """One-time weight re-layout: fused QKV, lane-dense (128-wide) padded proj."""
    C = n_embd
    wqkv = jnp.concatenate([wq, wk, wv], axis=1)                       # (C, 3C)
    wproj_p = jnp.zeros((C, LANE), jnp.float32).at[:, :C].set(wproj)   # pad 32 -> 128
    wproj_p = wproj_p.reshape(num_heads, head_size, LANE)              # (H, hs, 128)
    bproj_p = jnp.zeros((1, LANE), jnp.float32).at[:, :C].set(bproj)
    return wqkv, wproj_p, bproj_p


@jax.jit
def multi_head_attention(x, wqkv, wproj_p, bproj_p):
    B, T, C = x.shape
    out_padded = pl.pallas_call(
        mha_kernel,
        out_shape=jax.ShapeDtypeStruct((B, T, LANE), jnp.float32),
        grid=(1,),
        in_specs=[
            pl.BlockSpec((B, T, C), lambda i: (0, 0, 0)),
            pl.BlockSpec((C, 3 * C), lambda i: (0, 0)),
            pl.BlockSpec((num_heads, head_size, LANE), lambda i: (0, 0, 0)),
            pl.BlockSpec((1, LANE), lambda i: (0, 0)),
        ],
        out_specs=pl.BlockSpec((B, T, LANE), lambda i: (0, 0, 0)),
        compiler_params=pltpu.CompilerParams(dimension_semantics=("arbitrary",)),
    )(x, wqkv, wproj_p, bproj_p)
    # Drop the zero lane padding outside the kernel (keeps the HBM store unmasked).
    return out_padded[..., :C]


# ---------------- pure-JAX reference (PyTorch semantics, exact f32) ----------
def reference_mha(x, wq, wk, wv, wproj, bproj):
    B, T, C = x.shape
    hi = jax.lax.Precision.HIGHEST
    q = jnp.einsum('btc,cd->btd', x, wq, precision=hi)
    k = jnp.einsum('btc,cd->btd', x, wk, precision=hi)
    v = jnp.einsum('btc,cd->btd', x, wv, precision=hi)
    tril = jnp.tril(jnp.ones((T, T), dtype=bool))
    outs = []
    for h in range(num_heads):
        sl = slice(h * head_size, (h + 1) * head_size)
        wei = jnp.einsum('btd,bsd->bts', q[..., sl], k[..., sl], precision=hi)
        wei = wei * ATTN_SCALE
        wei = jnp.where(tril, wei, -jnp.inf)
        wei = jax.nn.softmax(wei, axis=-1)
        outs.append(jnp.einsum('bts,bsd->btd', wei, v[..., sl], precision=hi))
    sa = jnp.concatenate(outs, axis=-1)
    return jnp.einsum('btc,cd->btd', sa, wproj, precision=hi) + bproj


if __name__ == "__main__":
    key = jax.random.PRNGKey(0)
    kx, kq, kk, kv, kp, kb = jax.random.split(key, 6)
    B, T, C = 2, block_size, n_embd

    x = jax.random.normal(kx, (B, T, C), dtype=jnp.float32)
    wscale = 0.1
    wq = wscale * jax.random.normal(kq, (C, C), dtype=jnp.float32)
    wk = wscale * jax.random.normal(kk, (C, C), dtype=jnp.float32)
    wv = wscale * jax.random.normal(kv, (C, C), dtype=jnp.float32)
    wproj = wscale * jax.random.normal(kp, (C, C), dtype=jnp.float32)
    bproj = 0.05 * jax.random.normal(kb, (1, C), dtype=jnp.float32)

    fused = fuse_mha_params(wq, wk, wv, wproj, bproj)
    out = jax.block_until_ready(multi_head_attention(x, *fused))
    assert out.shape == (B, T, C)

    ref = jax.block_until_ready(reference_mha(x, wq, wk, wv, wproj, bproj))
    max_err = float(jnp.max(jnp.abs(out - ref)))
    # f32 matmuls + approx-reciprocal softmax denominator: small (<~1e-2)
    # deviations from the exact-precision reference are expected.
    assert jnp.allclose(out, ref, rtol=1e-2, atol=1e-2), f"max abs err {max_err}"

    print("KERNEL_OK")
</pallas_src>

<mosaic_0001>
module attributes {stable_mosaic.version = 11 : i64} {
  func.func @mha_kernel(%arg0: i32, %arg1: memref<2x8x32xf32, #tpu.memory_space<vmem>>, %arg2: memref<32x96xf32, #tpu.memory_space<vmem>>, %arg3: memref<4x8x128xf32, #tpu.memory_space<vmem>>, %arg4: memref<1x128xf32, #tpu.memory_space<vmem>>, %arg5: memref<2x8x128xf32, #tpu.memory_space<vmem>>) attributes {dimension_semantics = [#tpu.dimension_semantics<arbitrary>], iteration_bounds = array<i64: 1>, scalar_prefetch = 0 : i64, scratch_operands = 0 : i64, tpu.core_type = #tpu.core_type<tc>, window_params = [{pipeline_mode = #tpu.pipeline_mode<synchronous>, transform_indices = @transform_0, window_bounds = array<i64: 2, 8, 32>}, {pipeline_mode = #tpu.pipeline_mode<synchronous>, transform_indices = @transform_1, window_bounds = array<i64: 32, 96>}, {pipeline_mode = #tpu.pipeline_mode<synchronous>, transform_indices = @transform_2, window_bounds = array<i64: 4, 8, 128>}, {pipeline_mode = #tpu.pipeline_mode<synchronous>, transform_indices = @transform_3, window_bounds = array<i64: 1, 128>}, {pipeline_mode = #tpu.pipeline_mode<synchronous>, transform_indices = @transform_4, window_bounds = array<i64: 2, 8, 128>}]} {
    %c0 = arith.constant 0 : index
    %c0_0 = arith.constant 0 : index
    %c0_1 = arith.constant 0 : index
    %0 = vector.load %arg1[%c0, %c0_0, %c0_1] : memref<2x8x32xf32, #tpu.memory_space<vmem>>, vector<2x8x32xf32>
    %1 = vector.shape_cast %0 : vector<2x8x32xf32> to vector<16x32xf32>
    %c0_2 = arith.constant 0 : index
    %c0_3 = arith.constant 0 : index
    %2 = vector.load %arg2[%c0_2, %c0_3] : memref<32x96xf32, #tpu.memory_space<vmem>>, vector<32x96xf32>
    %cst = arith.constant dense<0.000000e+00> : vector<16x96xf32>
    %3 = tpu.matmul %1, %2, %cst {dimension_numbers = #tpu.dot_dimension_numbers<[1], [0], [0], [1], [0, 0, 1, 1], [], []>} : vector<16x32xf32>, vector<32x96xf32>, vector<16x96xf32> -> vector<16x96xf32>
    %4 = tpu.iota {dimensions = array<i32: 0>} : vector<8x8xi32>
    %5 = tpu.iota {dimensions = array<i32: 1>} : vector<8x8xi32>
    %6 = arith.cmpi sle, %5, %4 : vector<8x8xi32>
    %7 = vector.shape_cast %6 : vector<8x8xi1> to vector<1x8x8xi1>
    %cst_4 = arith.constant 0.000000e+00 : f32
    %8 = vector.broadcast %cst_4 : f32 to vector<16x128xf32>
    %9 = vector.extract_strided_slice %3 {offsets = [0, 0], sizes = [16, 8], strides = [1, 1]} : vector<16x96xf32> to vector<16x8xf32>
    %10 = vector.shape_cast %9 : vector<16x8xf32> to vector<2x8x8xf32>
    %11 = vector.extract_strided_slice %3 {offsets = [0, 32], sizes = [16, 8], strides = [1, 1]} : vector<16x96xf32> to vector<16x8xf32>
    %12 = vector.shape_cast %11 : vector<16x8xf32> to vector<2x8x8xf32>
    %13 = vector.extract_strided_slice %3 {offsets = [0, 64], sizes = [16, 8], strides = [1, 1]} : vector<16x96xf32> to vector<16x8xf32>
    %14 = vector.shape_cast %13 : vector<16x8xf32> to vector<2x8x8xf32>
    "tpu.trace_start"() <{level = 10 : i32, message = "btd,bsd->bts"}> : () -> ()
    %cst_5 = arith.constant dense<0.000000e+00> : vector<2x8x8xf32>
    %15 = tpu.matmul %10, %12, %cst_5 {dimension_numbers = #tpu.dot_dimension_numbers<[2], [2], [1], [1], [0, 0, 0, 1, 1, 1], [0], [0]>} : vector<2x8x8xf32>, vector<2x8x8xf32>, vector<2x8x8xf32> -> vector<2x8x8xf32>
    "tpu.trace_stop"() : () -> ()
    %cst_6 = arith.constant 0.176776692 : f32
    %16 = vector.broadcast %cst_6 : f32 to vector<2x8x8xf32>
    %17 = arith.mulf %15, %16 : vector<2x8x8xf32>
    %cst_7 = arith.constant 0xFF800000 : f32
    %18 = vector.shape_cast %7 : vector<1x8x8xi1> to vector<1x8x8xi1>
    %19 = vector.broadcast %18 : vector<1x8x8xi1> to vector<2x8x8xi1>
    %20 = vector.broadcast %cst_7 : f32 to vector<2x8x8xf32>
    %21 = arith.select %19, %17, %20 : vector<2x8x8xi1>, vector<2x8x8xf32>
    %cst_8 = arith.constant dense<0xFF800000> : vector<2x8xf32>
    %22 = vector.multi_reduction <maximumf>, %21, %cst_8 [2] : vector<2x8x8xf32> to vector<2x8xf32>
    %23 = vector.shape_cast %22 : vector<2x8xf32> to vector<2x8x1xf32>
    %24 = vector.broadcast %23 : vector<2x8x1xf32> to vector<2x8x8xf32>
    %25 = arith.subf %21, %24 : vector<2x8x8xf32>
    %26 = math.exp %25 : vector<2x8x8xf32>
    %cst_9 = arith.constant dense<0.000000e+00> : vector<2x8xf32>
    %27 = vector.multi_reduction <add>, %26, %cst_9 [2] : vector<2x8x8xf32> to vector<2x8xf32>
    %28 = vector.shape_cast %27 : vector<2x8xf32> to vector<2x8x1xf32>
    %29 = tpu.reciprocal %28 {approx = true} : vector<2x8x1xf32> -> vector<2x8x1xf32>
    %30 = vector.broadcast %29 : vector<2x8x1xf32> to vector<2x8x8xf32>
    %31 = arith.mulf %26, %30 : vector<2x8x8xf32>
    "tpu.trace_start"() <{level = 10 : i32, message = "bts,bsd->btd"}> : () -> ()
    %cst_10 = arith.constant dense<0.000000e+00> : vector<2x8x8xf32>
    %32 = tpu.matmul %31, %14, %cst_10 {dimension_numbers = #tpu.dot_dimension_numbers<[2], [1], [1], [2], [0, 0, 0, 1, 1, 2], [0], [0]>} : vector<2x8x8xf32>, vector<2x8x8xf32>, vector<2x8x8xf32> -> vector<2x8x8xf32>
    "tpu.trace_stop"() : () -> ()
    %33 = vector.shape_cast %32 : vector<2x8x8xf32> to vector<16x8xf32>
    %c0_11 = arith.constant 0 : index
    %c0_12 = arith.constant 0 : index
    %c0_13 = arith.constant 0 : index
    %34 = vector.load %arg3[%c0_11, %c0_12, %c0_13] : memref<4x8x128xf32, #tpu.memory_space<vmem>>, vector<1x8x128xf32>
    %35 = vector.shape_cast %34 : vector<1x8x128xf32> to vector<8x128xf32>
    %cst_14 = arith.constant dense<0.000000e+00> : vector<16x128xf32>
    %36 = tpu.matmul %33, %35, %cst_14 {dimension_numbers = #tpu.dot_dimension_numbers<[1], [0], [0], [1], [0, 0, 1, 1], [], []>} : vector<16x8xf32>, vector<8x128xf32>, vector<16x128xf32> -> vector<16x128xf32>
    %37 = arith.addf %8, %36 : vector<16x128xf32>
    %38 = vector.extract_strided_slice %3 {offsets = [0, 8], sizes = [16, 8], strides = [1, 1]} : vector<16x96xf32> to vector<16x8xf32>
    %39 = vector.shape_cast %38 : vector<16x8xf32> to vector<2x8x8xf32>
    %40 = vector.extract_strided_slice %3 {offsets = [0, 40], sizes = [16, 8], strides = [1, 1]} : vector<16x96xf32> to vector<16x8xf32>
    %41 = vector.shape_cast %40 : vector<16x8xf32> to vector<2x8x8xf32>
    %42 = vector.extract_strided_slice %3 {offsets = [0, 72], sizes = [16, 8], strides = [1, 1]} : vector<16x96xf32> to vector<16x8xf32>
    %43 = vector.shape_cast %42 : vector<16x8xf32> to vector<2x8x8xf32>
    "tpu.trace_start"() <{level = 10 : i32, message = "btd,bsd->bts"}> : () -> ()
    %cst_15 = arith.constant dense<0.000000e+00> : vector<2x8x8xf32>
    %44 = tpu.matmul %39, %41, %cst_15 {dimension_numbers = #tpu.dot_dimension_numbers<[2], [2], [1], [1], [0, 0, 0, 1, 1, 1], [0], [0]>} : vector<2x8x8xf32>, vector<2x8x8xf32>, vector<2x8x8xf32> -> vector<2x8x8xf32>
    "tpu.trace_stop"() : () -> ()
    %cst_16 = arith.constant 0.176776692 : f32
    %45 = vector.broadcast %cst_16 : f32 to vector<2x8x8xf32>
    %46 = arith.mulf %44, %45 : vector<2x8x8xf32>
    %cst_17 = arith.constant 0xFF800000 : f32
    %47 = vector.shape_cast %7 : vector<1x8x8xi1> to vector<1x8x8xi1>
    %48 = vector.broadcast %47 : vector<1x8x8xi1> to vector<2x8x8xi1>
    %49 = vector.broadcast %cst_17 : f32 to vector<2x8x8xf32>
    %50 = arith.select %48, %46, %49 : vector<2x8x8xi1>, vector<2x8x8xf32>
    %cst_18 = arith.constant dense<0xFF800000> : vector<2x8xf32>
    %51 = vector.multi_reduction <maximumf>, %50, %cst_18 [2] : vector<2x8x8xf32> to vector<2x8xf32>
    %52 = vector.shape_cast %51 : vector<2x8xf32> to vector<2x8x1xf32>
    %53 = vector.broadcast %52 : vector<2x8x1xf32> to vector<2x8x8xf32>
    %54 = arith.subf %50, %53 : vector<2x8x8xf32>
    %55 = math.exp %54 : vector<2x8x8xf32>
    %cst_19 = arith.constant dense<0.000000e+00> : vector<2x8xf32>
    %56 = vector.multi_reduction <add>, %55, %cst_19 [2] : vector<2x8x8xf32> to vector<2x8xf32>
    %57 = vector.shape_cast %56 : vector<2x8xf32> to vector<2x8x1xf32>
    %58 = tpu.reciprocal %57 {approx = true} : vector<2x8x1xf32> -> vector<2x8x1xf32>
    %59 = vector.broadcast %58 : vector<2x8x1xf32> to vector<2x8x8xf32>
    %60 = arith.mulf %55, %59 : vector<2x8x8xf32>
    "tpu.trace_start"() <{level = 10 : i32, message = "bts,bsd->btd"}> : () -> ()
    %cst_20 = arith.constant dense<0.000000e+00> : vector<2x8x8xf32>
    %61 = tpu.matmul %60, %43, %cst_20 {dimension_numbers = #tpu.dot_dimension_numbers<[2], [1], [1], [2], [0, 0, 0, 1, 1, 2], [0], [0]>} : vector<2x8x8xf32>, vector<2x8x8xf32>, vector<2x8x8xf32> -> vector<2x8x8xf32>
    "tpu.trace_stop"() : () -> ()
    %62 = vector.shape_cast %61 : vector<2x8x8xf32> to vector<16x8xf32>
    %c1 = arith.constant 1 : index
    %c0_21 = arith.constant 0 : index
    %c0_22 = arith.constant 0 : index
    %63 = vector.load %arg3[%c1, %c0_21, %c0_22] : memref<4x8x128xf32, #tpu.memory_space<vmem>>, vector<1x8x128xf32>
    %64 = vector.shape_cast %63 : vector<1x8x128xf32> to vector<8x128xf32>
    %cst_23 = arith.constant dense<0.000000e+00> : vector<16x128xf32>
    %65 = tpu.matmul %62, %64, %cst_23 {dimension_numbers = #tpu.dot_dimension_numbers<[1], [0], [0], [1], [0, 0, 1, 1], [], []>} : vector<16x8xf32>, vector<8x128xf32>, vector<16x128xf32> -> vector<16x128xf32>
    %66 = arith.addf %37, %65 : vector<16x128xf32>
    %67 = vector.extract_strided_slice %3 {offsets = [0, 16], sizes = [16, 8], strides = [1, 1]} : vector<16x96xf32> to vector<16x8xf32>
    %68 = vector.shape_cast %67 : vector<16x8xf32> to vector<2x8x8xf32>
    %69 = vector.extract_strided_slice %3 {offsets = [0, 48], sizes = [16, 8], strides = [1, 1]} : vector<16x96xf32> to vector<16x8xf32>
    %70 = vector.shape_cast %69 : vector<16x8xf32> to vector<2x8x8xf32>
    %71 = vector.extract_strided_slice %3 {offsets = [0, 80], sizes = [16, 8], strides = [1, 1]} : vector<16x96xf32> to vector<16x8xf32>
    %72 = vector.shape_cast %71 : vector<16x8xf32> to vector<2x8x8xf32>
    "tpu.trace_start"() <{level = 10 : i32, message = "btd,bsd->bts"}> : () -> ()
    %cst_24 = arith.constant dense<0.000000e+00> : vector<2x8x8xf32>
    %73 = tpu.matmul %68, %70, %cst_24 {dimension_numbers = #tpu.dot_dimension_numbers<[2], [2], [1], [1], [0, 0, 0, 1, 1, 1], [0], [0]>} : vector<2x8x8xf32>, vector<2x8x8xf32>, vector<2x8x8xf32> -> vector<2x8x8xf32>
    "tpu.trace_stop"() : () -> ()
    %cst_25 = arith.constant 0.176776692 : f32
    %74 = vector.broadcast %cst_25 : f32 to vector<2x8x8xf32>
    %75 = arith.mulf %73, %74 : vector<2x8x8xf32>
    %cst_26 = arith.constant 0xFF800000 : f32
    %76 = vector.shape_cast %7 : vector<1x8x8xi1> to vector<1x8x8xi1>
    %77 = vector.broadcast %76 : vector<1x8x8xi1> to vector<2x8x8xi1>
    %78 = vector.broadcast %cst_26 : f32 to vector<2x8x8xf32>
    %79 = arith.select %77, %75, %78 : vector<2x8x8xi1>, vector<2x8x8xf32>
    %cst_27 = arith.constant dense<0xFF800000> : vector<2x8xf32>
    %80 = vector.multi_reduction <maximumf>, %79, %cst_27 [2] : vector<2x8x8xf32> to vector<2x8xf32>
    %81 = vector.shape_cast %80 : vector<2x8xf32> to vector<2x8x1xf32>
    %82 = vector.broadcast %81 : vector<2x8x1xf32> to vector<2x8x8xf32>
    %83 = arith.subf %79, %82 : vector<2x8x8xf32>
    %84 = math.exp %83 : vector<2x8x8xf32>
    %cst_28 = arith.constant dense<0.000000e+00> : vector<2x8xf32>
    %85 = vector.multi_reduction <add>, %84, %cst_28 [2] : vector<2x8x8xf32> to vector<2x8xf32>
    %86 = vector.shape_cast %85 : vector<2x8xf32> to vector<2x8x1xf32>
    %87 = tpu.reciprocal %86 {approx = true} : vector<2x8x1xf32> -> vector<2x8x1xf32>
    %88 = vector.broadcast %87 : vector<2x8x1xf32> to vector<2x8x8xf32>
    %89 = arith.mulf %84, %88 : vector<2x8x8xf32>
    "tpu.trace_start"() <{level = 10 : i32, message = "bts,bsd->btd"}> : () -> ()
    %cst_29 = arith.constant dense<0.000000e+00> : vector<2x8x8xf32>
    %90 = tpu.matmul %89, %72, %cst_29 {dimension_numbers = #tpu.dot_dimension_numbers<[2], [1], [1], [2], [0, 0, 0, 1, 1, 2], [0], [0]>} : vector<2x8x8xf32>, vector<2x8x8xf32>, vector<2x8x8xf32> -> vector<2x8x8xf32>
    "tpu.trace_stop"() : () -> ()
    %91 = vector.shape_cast %90 : vector<2x8x8xf32> to vector<16x8xf32>
    %c2 = arith.constant 2 : index
    %c0_30 = arith.constant 0 : index
    %c0_31 = arith.constant 0 : index
    %92 = vector.load %arg3[%c2, %c0_30, %c0_31] : memref<4x8x128xf32, #tpu.memory_space<vmem>>, vector<1x8x128xf32>
    %93 = vector.shape_cast %92 : vector<1x8x128xf32> to vector<8x128xf32>
    %cst_32 = arith.constant dense<0.000000e+00> : vector<16x128xf32>
    %94 = tpu.matmul %91, %93, %cst_32 {dimension_numbers = #tpu.dot_dimension_numbers<[1], [0], [0], [1], [0, 0, 1, 1], [], []>} : vector<16x8xf32>, vector<8x128xf32>, vector<16x128xf32> -> vector<16x128xf32>
    %95 = arith.addf %66, %94 : vector<16x128xf32>
    %96 = vector.extract_strided_slice %3 {offsets = [0, 24], sizes = [16, 8], strides = [1, 1]} : vector<16x96xf32> to vector<16x8xf32>
    %97 = vector.shape_cast %96 : vector<16x8xf32> to vector<2x8x8xf32>
    %98 = vector.extract_strided_slice %3 {offsets = [0, 56], sizes = [16, 8], strides = [1, 1]} : vector<16x96xf32> to vector<16x8xf32>
    %99 = vector.shape_cast %98 : vector<16x8xf32> to vector<2x8x8xf32>
    %100 = vector.extract_strided_slice %3 {offsets = [0, 88], sizes = [16, 8], strides = [1, 1]} : vector<16x96xf32> to vector<16x8xf32>
    %101 = vector.shape_cast %100 : vector<16x8xf32> to vector<2x8x8xf32>
    "tpu.trace_start"() <{level = 10 : i32, message = "btd,bsd->bts"}> : () -> ()
    %cst_33 = arith.constant dense<0.000000e+00> : vector<2x8x8xf32>
    %102 = tpu.matmul %97, %99, %cst_33 {dimension_numbers = #tpu.dot_dimension_numbers<[2], [2], [1], [1], [0, 0, 0, 1, 1, 1], [0], [0]>} : vector<2x8x8xf32>, vector<2x8x8xf32>, vector<2x8x8xf32> -> vector<2x8x8xf32>
    "tpu.trace_stop"() : () -> ()
    %cst_34 = arith.constant 0.176776692 : f32
    %103 = vector.broadcast %cst_34 : f32 to vector<2x8x8xf32>
    %104 = arith.mulf %102, %103 : vector<2x8x8xf32>
    %cst_35 = arith.constant 0xFF800000 : f32
    %105 = vector.shape_cast %7 : vector<1x8x8xi1> to vector<1x8x8xi1>
    %106 = vector.broadcast %105 : vector<1x8x8xi1> to vector<2x8x8xi1>
    %107 = vector.broadcast %cst_35 : f32 to vector<2x8x8xf32>
    %108 = arith.select %106, %104, %107 : vector<2x8x8xi1>, vector<2x8x8xf32>
    %cst_36 = arith.constant dense<0xFF800000> : vector<2x8xf32>
    %109 = vector.multi_reduction <maximumf>, %108, %cst_36 [2] : vector<2x8x8xf32> to vector<2x8xf32>
    %110 = vector.shape_cast %109 : vector<2x8xf32> to vector<2x8x1xf32>
    %111 = vector.broadcast %110 : vector<2x8x1xf32> to vector<2x8x8xf32>
    %112 = arith.subf %108, %111 : vector<2x8x8xf32>
    %113 = math.exp %112 : vector<2x8x8xf32>
    %cst_37 = arith.constant dense<0.000000e+00> : vector<2x8xf32>
    %114 = vector.multi_reduction <add>, %113, %cst_37 [2] : vector<2x8x8xf32> to vector<2x8xf32>
    %115 = vector.shape_cast %114 : vector<2x8xf32> to vector<2x8x1xf32>
    %116 = tpu.reciprocal %115 {approx = true} : vector<2x8x1xf32> -> vector<2x8x1xf32>
    %117 = vector.broadcast %116 : vector<2x8x1xf32> to vector<2x8x8xf32>
    %118 = arith.mulf %113, %117 : vector<2x8x8xf32>
    "tpu.trace_start"() <{level = 10 : i32, message = "bts,bsd->btd"}> : () -> ()
    %cst_38 = arith.constant dense<0.000000e+00> : vector<2x8x8xf32>
    %119 = tpu.matmul %118, %101, %cst_38 {dimension_numbers = #tpu.dot_dimension_numbers<[2], [1], [1], [2], [0, 0, 0, 1, 1, 2], [0], [0]>} : vector<2x8x8xf32>, vector<2x8x8xf32>, vector<2x8x8xf32> -> vector<2x8x8xf32>
    "tpu.trace_stop"() : () -> ()
    %120 = vector.shape_cast %119 : vector<2x8x8xf32> to vector<16x8xf32>
    %c3 = arith.constant 3 : index
    %c0_39 = arith.constant 0 : index
    %c0_40 = arith.constant 0 : index
    %121 = vector.load %arg3[%c3, %c0_39, %c0_40] : memref<4x8x128xf32, #tpu.memory_space<vmem>>, vector<1x8x128xf32>
    %122 = vector.shape_cast %121 : vector<1x8x128xf32> to vector<8x128xf32>
    %cst_41 = arith.constant dense<0.000000e+00> : vector<16x128xf32>
    %123 = tpu.matmul %120, %122, %cst_41 {dimension_numbers = #tpu.dot_dimension_numbers<[1], [0], [0], [1], [0, 0, 1, 1], [], []>} : vector<16x8xf32>, vector<8x128xf32>, vector<16x128xf32> -> vector<16x128xf32>
    %124 = arith.addf %95, %123 : vector<16x128xf32>
    %c0_42 = arith.constant 0 : index
    %c0_43 = arith.constant 0 : index
    %125 = vector.load %arg4[%c0_42, %c0_43] : memref<1x128xf32, #tpu.memory_space<vmem>>, vector<1x128xf32>
    %126 = vector.broadcast %125 : vector<1x128xf32> to vector<16x128xf32>
    %127 = arith.addf %124, %126 : vector<16x128xf32>
    %128 = vector.shape_cast %127 : vector<16x128xf32> to vector<2x8x128xf32>
    %c0_44 = arith.constant 0 : index
    %c0_45 = arith.constant 0 : index
    %c0_46 = arith.constant 0 : index
    %129 = vector.load %arg5[%c0_44, %c0_45, %c0_46] : memref<2x8x128xf32, #tpu.memory_space<vmem>>, vector<2x8x128xf32>
    tpu.vector_store %arg5[%c0_44, %c0_45, %c0_46], %128 {strides = array<i32>} : memref<2x8x128xf32, #tpu.memory_space<vmem>>, vector<2x8x128xf32>,
    return
  }
  func.func @transform_0(%arg0: i32) -> (i32, i32, i32) {
    %c0_i32 = arith.constant 0 : i32
    %c0_i32_0 = arith.constant 0 : i32
    %c0_i32_1 = arith.constant 0 : i32
    %c0_i32_2 = arith.constant 0 : i32
    return %c0_i32, %c0_i32_0, %c0_i32_1 : i32, i32, i32
  }
  func.func @transform_1(%arg0: i32) -> (i32, i32) {
    %c0_i32 = arith.constant 0 : i32
    %c0_i32_0 = arith.constant 0 : i32
    %c0_i32_1 = arith.constant 0 : i32
    return %c0_i32, %c0_i32_0 : i32, i32
  }
  func.func @transform_2(%arg0: i32) -> (i32, i32, i32) {
    %c0_i32 = arith.constant 0 : i32
    %c0_i32_0 = arith.constant 0 : i32
    %c0_i32_1 = arith.constant 0 : i32
    %c0_i32_2 = arith.constant 0 : i32
    return %c0_i32, %c0_i32_0, %c0_i32_1 : i32, i32, i32
  }
  func.func @transform_3(%arg0: i32) -> (i32, i32) {
    %c0_i32 = arith.constant 0 : i32
    %c0_i32_0 = arith.constant 0 : i32
    %c0_i32_1 = arith.constant 0 : i32
    return %c0_i32, %c0_i32_0 : i32, i32
  }
  func.func @transform_4(%arg0: i32) -> (i32, i32, i32) {
    %c0_i32 = arith.constant 0 : i32
    %c0_i32_0 = arith.constant 0 : i32
    %c0_i32_1 = arith.constant 0 : i32
    %c0_i32_2 = arith.constant 0 : i32
    return %c0_i32, %c0_i32_0, %c0_i32_1 : i32, i32, i32
  }
}

</mosaic_0001>

<bundles_post_ra>
// kernel: multi_head_attention.1
= control target key start
LH: loop header
LB: loop body
LE: loop exit
PB: predicated region body
PF: predicated region fallthrough
CT: control target
= control target key end

     0   :  { %9 = vsyncpa [#allocation3], 0  ;;  %s2478_s0 = inlined_call_operand.hbm [shape: f32[2,8,32], index: 0, kind: input, shape index: {}]   ;;  %s2479_s1 = inlined_call_operand.hbm [shape: f32[32,96], index: 1, kind: input, shape index: {}]   ;;  %s2480_s2 = inlined_call_operand.hbm [shape: f32[4,8,128], index: 2, kind: input, shape index: {}]   ;;  %s2481_s3 = inlined_call_operand.vmem [shape: f32[1,128], index: 3, kind: input, shape index: {}]   ;;  %s2482_s4 = inlined_call_operand.hbm [shape: f32[2,8,128], index: 4, kind: output, shape index: {}]  }
   0x1   :  { %10 = vsyncpa [#allocation6], 0 }
   0x2   :  { %11 = vsyncpa [#allocation4], 0  ;;  %s2208_s15 = smov [#allocation5]   ;;  %s2209_s17 = smov [#allocation2]  }
   0x3   :  { %s29_s16 = sshll.u32 %s2208_s15, 4  ;;  %s17_s18 = sshll.u32 %s2209_s17, 4  ;;  %s30_s16 = int_to_ptr.vmem [resolvable:$true] %s29_s16  ;;  %s2252_s18 = int_to_ptr.vmem [resolvable:$true] %s17_s18 }
   0x4   :  { %s2114_s21 = scalar_lea.hbm %s2479_s1, 512 }
   0x5   :  { %p2115_p0 = scmp.ne.s32.totalorder %s2479_s1, %s2114_s21  ;;  %p2118_p1 = scmp.lt.u32.totalorder %s2114_s21, %s2479_s1 }
   0x7   :  { %p2120_p2 = pnand %p2118_p1, %p2115_p0 }
   0x9   :  { %2123 = shalt.err (!%p2120_p2)
}
   0xa   :  { %s2124_s26 = scalar_lea.vmem %s30_s16, 512  ;;  %p2129_p4 = scmp.lt.s32.totalorder %s30_s16, %s30_s16 }
   0xb   :  { %p2125_p3 = scmp.ne.s32.totalorder %s30_s16, %s2124_s26  ;;  %p2130_p5 = scmp.lt.s32.totalorder %s2124_s26, %s2124_s26 }
   0xd   :  { %p2131_p6 = por %p2130_p5, %p2129_p4 }
   0xf   :  { %p2132_p7 = pnand %p2131_p6, %p2125_p3 }
  0x11   :  { %2135 = shalt.err (!%p2132_p7)
}
  0x12   :  { %s2210_s27 = smov 128   ;;  %s2211_s28 = smov 8  }
  0x13   :  { %35 = dma.hbm_to_vmem [thread:$0]  %s2479_s1, 512, %s30_s16, [#allocation6], %s2210_s27, %s2210_s27, %s2211_s28  }
  0x14   :  { %s2136_s7 = scalar_lea.hbm %s2478_s0, 256 }
  0x15   :  { %p2137_p8 = scmp.ne.s32.totalorder %s2478_s0, %s2136_s7  ;;  %p2140_p9 = scmp.lt.u32.totalorder %s2136_s7, %s2478_s0 }
  0x17   :  { %p2142_p10 = pnand %p2140_p9, %p2137_p8 }
  0x19   :  { %2145 = shalt.err (!%p2142_p10)
}
  0x1a   :  { %s2146_s12 = scalar_lea.vmem %s2252_s18, 256  ;;  %p2151_p12 = scmp.lt.s32.totalorder %s2252_s18, %s2252_s18 }
  0x1b   :  { %p2147_p11 = scmp.ne.s32.totalorder %s2252_s18, %s2146_s12  ;;  %p2152_p13 = scmp.lt.s32.totalorder %s2146_s12, %s2146_s12 }
  0x1d   :  { %p2153_p0 = por %p2152_p13, %p2151_p12 }
  0x1f   :  { %p2154_p1 = pnand %p2153_p0, %p2147_p11 }
  0x21   :  { %2157 = shalt.err (!%p2154_p1)
}
  0x22   :  { %23 = dma.hbm_to_vmem [thread:$0]  %s2478_s0, 256, %s2252_s18, [#allocation3], %s2210_s27, %s2210_s27, %s2211_s28  }
  0x23   :  { %s2212_s14 = smov [#allocation7]   ;;  %s2158_s19 = scalar_lea.hbm %s2480_s2, 512 }
  0x24   :  { %s41_s15 = sshll.u32 %s2212_s14, 4  ;;  %p2159_p2 = scmp.ne.s32.totalorder %s2480_s2, %s2158_s19  ;;  %s42_s15 = int_to_ptr.vmem [resolvable:$true] %s41_s15 }
  0x25   :  { %p2162_p3 = scmp.lt.u32.totalorder %s2158_s19, %s2480_s2 }
  0x27   :  { %p2164_p4 = pnand %p2162_p3, %p2159_p2 }
  0x29   :  { %2167 = shalt.err (!%p2164_p4)
}
  0x2a   :  { %s2168_s24 = scalar_lea.vmem %s42_s15, 512  ;;  %p2173_p6 = scmp.lt.s32.totalorder %s42_s15, %s42_s15 }
  0x2b   :  { %p2169_p5 = scmp.ne.s32.totalorder %s42_s15, %s2168_s24  ;;  %p2174_p7 = scmp.lt.s32.totalorder %s2168_s24, %s2168_s24 }
  0x2d   :  { %p2175_p8 = por %p2174_p7, %p2173_p6 }
  0x2f   :  { %p2176_p9 = pnand %p2175_p8, %p2169_p5 }
  0x31   :  { %2179 = shalt.err (!%p2176_p9)
}
  0x32   :  { %47 = dma.hbm_to_vmem [thread:$0]  %s2480_s2, 512, %s42_s15, [#allocation6], %s2210_s27, %s2210_s27, %s2211_s28  }
  0x33   :  { %2202 = dma.done.wait [#allocation3], 256  }
  0x34   :  { %2203 = vsyncadd [#allocation3], 4294967040 }
  0x35   :  { %2204 = dma.done.wait [#allocation6], 1024  }
  0x36   :  { %2205 = vsyncadd [#allocation6], 4294966272  ;;  %vm65_vm0 = vcmask 261120   ;;  %v61_v0 = vld [vmem:[#allocation5] sm:$0xff]  ;;  %v62_v1 = vld [vmem:[#allocation5 + $0x8] sm:$0xff]  ;;  %v2213_v8 = vmov 0.0   ;;  %v147_v13 = vlaneseq }
  0x37   :  { %v63_v2 = vld [vmem:[#allocation5 + $0x10] sm:$0xff]  ;;  %v2049_v3 = vpack.c.bf16 %v62_v1, %v61_v0  ;;  %v64_v4 = vld [vmem:[#allocation5 + $0x18] sm:$0xff]  ;;  %1949 = vmatprep.subr.mxu1 %v2213_v8  ;;  %vm2214_vm1 = vmmov 0   ;;  %s2215_s2 = smov 96   ;;  %vm155_vm2 = vcmask 64512   ;;  %s2216_s25 = smov 64  }
  0x38   :  { %v59_v5 = vld [vmem:[#allocation2] sm:$0xff]  ;;  %v2053_v6 = vpack.c.bf16 %v64_v4, %v63_v2  ;;  %v60_v7 = vld [vmem:[#allocation2 + $0x8] sm:$0xff]  ;;  %1951 = vmatprep.mubr.msk.f32.mxu1 %vm2214_vm1, %v2213_v8  ;;  %v148_v14 = vshrl.u32 %v147_v13, 7  ;;  %v150_v15 = vand.u32 127, %v147_v13  ;;  %s2217_s26 = smov 88   ;;  %s2218_s29 = smov 120  }
  0x39   :  { %1946 = vmatprep.mubr.msk.f32.mxu0 %vm65_vm0, %v59_v5  ;;  %2050 = vmatprep.subr.bf16.mxu0 %v2049_v3  ;;  %s2219_s30 = smov 56   ;;  %s2220_s5 = smov 112  }
  0x3a   :  { %2052 = vmatpush3.bf16.msra.mxu0 %v2049_v3  ;;  %vm2328_vm3 = vcmp.le.s32.totalorder %v150_v15, %v148_v14  ;;  %s2221_s6 = smov 80   ;;  %s2222_s7 = smov 48  }
  0x3b   :  { %2054 = vmatprep.subr.bf16.mxu0 %v2053_v6  ;;  %s2223_s8 = smov 72   ;;  %s2224_s9 = smov 104  }
  0x3c   :  { %s2225_s10 = smov 40   ;;  %s2226_s1 = smov [#allocation8]  }
  0x3d   :  { %s1840_s13 = sshll.u32 %s2226_s1, 4  ;;  %s1841_s13 = int_to_ptr.vmem [resolvable:$true] %s1840_s13 }
  0x3e   :  { %2056 = vmatpush3.bf16.msra.mxu0 %v2053_v6  ;;  %s2180_s14 = scalar_lea.vmem %s1841_s13, 256  ;;  %p2185_p11 = scmp.lt.s32.totalorder %s1841_s13, %s1841_s13 }
  0x3f   :  { %1969 = vmatprep.subr.mxu0 %v2213_v8  ;;  %p2181_p10 = scmp.ne.s32.totalorder %s1841_s13, %s2180_s14  ;;  %p2186_p12 = scmp.lt.s32.totalorder %s2180_s14, %s2180_s14 }
  0x41   :  { %1947 = vmatmul.mubr.msk.f32.vlgmr.msra.gmra.mrb[0].mxu0 %vm65_vm0, %v60_v7  ;;  %p2187_p13 = por %p2186_p12, %p2185_p11 }
  0x42   :  { %1971 = vmatprep.mubr.msk.f32.mxu0 %vm2214_vm1, %v2213_v8 }
  0x43   :  { %p2188_p0 = pnand %p2187_p13, %p2181_p10 }
 0x114   :  { %v2310_v9 = vpop.f32.mrb[0].mxu0 }
 0x115   :  { %v2312_v10 = vpop.f32.mrb[1].mxu0 }
 0x116   :  { %153 = vrot.lane.b32.xlu0 %v2312_v10, %s2215_s2 }
 0x11a   :  { %231 = vrot.lane.b32.xlu0 %v2310_v9, %s2215_s2 }
 0x188   :  { %v154_v11 = vpop.permute.xlu0 %153 }
 0x189   :  { %1950 = vmatpush3.xpose.msk.msra.mxu1 %vm155_vm2, %v154_v11 }
 0x18a   :  { %1954 = vmatprep.subr.mxu1 %v2213_v8 }
 0x18c   :  { %1952 = vmatmul.mubr.msk.f32.vlgmr.msra.gmra.mrb[0].mxu1 %vm155_vm2, %v2312_v10  ;;  %v232_v12 = vpop.permute.xlu0 %231 }
 0x18d   :  { %1955 = vmatpush3.xpose.msk.msra.mxu1 %vm155_vm2, %v232_v12  ;;  %1956 = vmatprep.mubr.msk.f32.mxu1 %vm2214_vm1, %v2213_v8 }
 0x18e   :  { %1959 = vmatprep.subr.mxu1 %v2213_v8 }
 0x190   :  { %1957 = vmatmul.mubr.msk.f32.vlgmr.msra.gmra.mrb[2].mxu1 %vm155_vm2, %v2310_v9 }
 0x191   :  { %1961 = vmatprep.mubr.msk.f32.mxu1 %vm2214_vm1, %v2213_v8 }
 0x25f   :  { %v226_v16 = vpop.f32.mrb[0].mxu1 }
 0x260   :  { %v307_v18 = vmul.f32 0.17677669, %v226_v16  ;;  %v1953_v19 = vpop.f32.mrb[1].mxu1 }
 0x262   :  { %v311_v20 = vsel %vm2328_vm3, %v307_v18, -inf }
 0x263   :  { %v303_v21 = vpop.f32.mrb[2].mxu1  ;;  %v313_v22 = vsel %vm155_vm2, %v311_v20, -inf }
 0x264   :  { %v308_v23 = vmul.f32 0.17677669, %v303_v21  ;;  %314 = vmax.xlane.f32.xlu1 %v313_v22  ;;  %v1958_v24 = vpop.f32.mrb[3].mxu1 }
 0x266   :  { %v312_v25 = vsel %vm2328_vm3, %v308_v23, -inf }
 0x267   :  { %v316_v26 = vsel %vm155_vm2, %v312_v25, -inf }
 0x268   :  { %317 = vmax.xlane.f32.xlu1 %v316_v26  ;;  %v823_v26 = vld [vmem:[#allocation7 + $0x8] sm:$0xff] }
 0x279   :  { %335 = vrot.lane.b32.xlu1 %v2312_v10, %s2216_s25 }
 0x27d   :  { %411 = vrot.lane.b32.xlu1 %v2310_v9, %s2216_s25 }
 0x281   :  { %568 = vrot.lane.b32.xlu1 %v2310_v9, %s2217_s26 }
 0x2f1   :  { %v315_v27 = vpop.xlane.xlu1 %314 }
 0x2f2   :  { %v319_v28 = vsub.f32 %v311_v20, %v315_v27  ;;  %v487_v27 = vld [vmem:[#allocation7] sm:$0xff] }
 0x2f4   :  { %v321_v29 = vmul.f32 1.442695, %v319_v28 }
 0x2f5   :  { %v318_v30 = vpop.xlane.xlu1 %317 }
 0x2f6   :  { %2082 = vpow2.f32 %v321_v29  ;;  %v320_v31 = vsub.f32 %v312_v25, %v318_v30 }
 0x2f8   :  { %v323_v32 = vmul.f32 1.442695, %v320_v31 }
 0x2f9   :  { %v336_v33 = vpop.permute.xlu1 %335 }
 0x2fa   :  { %2084 = vpow2.f32 %v323_v32  ;;  %1960 = vmatpush3.msra.mxu1 %v336_v33 }
 0x2fb   :  { %1964 = vmatprep.subr.mxu1 %v2213_v8 }
 0x2fd   :  { %v412_v38 = vpop.permute.xlu1 %411 }
 0x300   :  { %v2083_v34 = vpop.eup %2082 }
 0x301   :  { %v325_v35 = vsel %vm155_vm2, %v2083_v34, 0.0  ;;  %v569_v39 = vpop.permute.xlu1 %568 }
 0x302   :  { %326 = vadd.xlane.f32.xlu0 %v325_v35 }
 0x304   :  { %v2085_v36 = vpop.eup %2084 }
 0x305   :  { %v328_v37 = vsel %vm155_vm2, %v2085_v36, 0.0 }
 0x306   :  { %329 = vadd.xlane.f32.xlu1 %v328_v37 }
 0x317   :  { %566 = vrot.lane.b32.xlu1 %v2310_v9, %s2218_s29 }
 0x318   :  { %490 = vrot.lane.b32.xlu0 %v2312_v10, %s2217_s26 }
 0x31b   :  { %488 = vrot.lane.b32.xlu1 %v2312_v10, %s2218_s29 }
 0x38f   :  { %v327_v40 = vpop.xlane.xlu0 %326 }
 0x390   :  { %2086 = vrcp.f32 %v327_v40 }
 0x393   :  { %v330_v41 = vpop.xlane.xlu1 %329  ;;  %v491_v42 = vpop.permute.xlu0 %490 }
 0x394   :  { %2088 = vrcp.f32 %v330_v41  ;;  %1970 = vmatpush3.xpose.msk.msra.mxu0 %vm155_vm2, %v491_v42 }
 0x395   :  { %1979 = vmatprep.subr.mxu0 %v2213_v8 }
 0x397   :  { %v567_v43 = vpop.permute.xlu1 %566 }
 0x39a   :  { %v2087_v44 = vpop.eup %2086 }
 0x39b   :  { %v333_v45 = vmul.f32 %v2087_v44, %v2083_v34  ;;  %v489_v46 = vpop.permute.xlu1 %488 }
 0x39c   :  { %1972 = vmatmul.mubr.msk.f32.vlgmr.msra.gmra.mrb[2].mxu0 %vm155_vm2, %v489_v46 }
 0x39d   :  { %1962 = vmatmul.mubr.msk.f32.vlgmr.msra.gmra.mrb[4].mxu1 %vm155_vm2, %v333_v45  ;;  %1981 = vmatprep.mubr.msk.f32.mxu0 %vm2214_vm1, %v2213_v8 }
 0x39e   :  { %v2089_v47 = vpop.eup %2088  ;;  %1965 = vmatpush3.msra.mxu1 %v412_v38  ;;  %1966 = vmatprep.mubr.msk.f32.mxu1 %vm2214_vm1, %v2213_v8 }
 0x39f   :  { %v334_v48 = vmul.f32 %v2089_v47, %v2085_v36  ;;  %1974 = vmatprep.subr.mxu1 %v2213_v8 }
 0x3a1   :  { %1967 = vmatmul.mubr.msk.f32.vlgmr.msra.gmra.mrb[6].mxu1 %vm155_vm2, %v334_v48 }
 0x3a2   :  { %1976 = vmatprep.mubr.msk.f32.mxu1 %vm2214_vm1, %v2213_v8 }
 0x3a5   :  { %1975 = vmatpush3.xpose.msk.msra.mxu1 %vm155_vm2, %v569_v39 }
 0x3a6   :  { %1984 = vmatprep.subr.mxu1 %v2213_v8 }
 0x3a8   :  { %1977 = vmatmul.mubr.msk.f32.vlgmr.msra.gmra.mrb[8].mxu1 %vm155_vm2, %v567_v43 }
 0x3a9   :  { %1986 = vmatprep.mubr.msk.f32.mxu1 %vm2214_vm1, %v2213_v8 }
 0x46f   :  { %v562_v49 = vpop.f32.mrb[2].mxu0 }
 0x470   :  { %v2364_v50 = vpop.f32.mrb[4].mxu1  ;;  %v1973_v51 = vpop.f32.mrb[3].mxu0  ;;  %v644_v60 = vmul.f32 0.17677669, %v562_v49 }
 0x471   :  { %v1963_v52 = vpop.f32.mrb[5].mxu1 }
 0x472   :  { %v646_v61 = vsel %vm2328_vm3, %v644_v60, -inf }
 0x473   :  { %v648_v62 = vsel %vm155_vm2, %v646_v61, -inf }
 0x474   :  { %v2366_v53 = vpop.f32.mrb[6].mxu1 }
 0x475   :  { %v1968_v54 = vpop.f32.mrb[7].mxu1 }
 0x476   :  { %v1321_v54 = vld [vmem:[#allocation7 + $0x10] sm:$0xff] }
 0x47b   :  { %v640_v55 = vpop.f32.mrb[8].mxu1 }
 0x47c   :  { %v645_v56 = vmul.f32 0.17677669, %v640_v55  ;;  %v1978_v57 = vpop.f32.mrb[9].mxu1 }
 0x47e   :  { %v647_v58 = vsel %vm2328_vm3, %v645_v56, -inf }
 0x47f   :  { %v651_v59 = vsel %vm155_vm2, %v647_v58, -inf }
 0x480   :  { %652 = vmax.xlane.f32.xlu1 %v651_v59 }
 0x491   :  { %746 = vrot.lane.b32.xlu1 %v2310_v9, %s2219_s30 }
 0x495   :  { %986 = vrot.lane.b32.xlu1 %v2312_v10, %s2220_s5 }
 0x499   :  { %1066 = vrot.lane.b32.xlu1 %v2310_v9, %s2221_s6 }
 0x49d   :  { %1064 = vrot.lane.b32.xlu1 %v2310_v9, %s2220_s5 }
 0x4c1   :  { %649 = vmax.xlane.f32.xlu1 %v648_v62 }
 0x50d   :  { %v653_v63 = vpop.xlane.xlu1 %652 }
 0x50e   :  { %v655_v0 = vsub.f32 %v647_v58, %v653_v63 }
 0x510   :  { %v658_v1 = vmul.f32 1.442695, %v655_v0 }
 0x511   :  { %v747_v2 = vpop.permute.xlu1 %746 }
 0x512   :  { %2090 = vpow2.f32 %v658_v1  ;;  %1985 = vmatpush3.msra.mxu1 %v747_v2 }
 0x513   :  { %1999 = vmatprep.subr.mxu1 %v2213_v8 }
 0x515   :  { %v987_v5 = vpop.permute.xlu1 %986 }
 0x519   :  { %v1067_v6 = vpop.permute.xlu1 %1066 }
 0x51c   :  { %v2091_v3 = vpop.eup %2090 }
 0x51d   :  { %v663_v4 = vsel %vm155_vm2, %v2091_v3, 0.0  ;;  %v1065_v7 = vpop.permute.xlu1 %1064 }
 0x51e   :  { %664 = vadd.xlane.f32.xlu0 %v663_v4 }
 0x534   :  { %988 = vrot.lane.b32.xlu0 %v2312_v10, %s2221_s6 }
 0x54e   :  { %v650_v11 = vpop.xlane.xlu1 %649 }
 0x54f   :  { %v654_v12 = vsub.f32 %v646_v61, %v650_v11 }
 0x551   :  { %v656_v13 = vmul.f32 1.442695, %v654_v12 }
 0x553   :  { %2092 = vpow2.f32 %v656_v13 }
 0x55d   :  { %v2093_v14 = vpop.eup %2092 }
 0x55e   :  { %v660_v15 = vsel %vm155_vm2, %v2093_v14, 0.0 }
 0x55f   :  { %661 = vadd.xlane.f32.xlu0 %v660_v15 }
 0x575   :  { %670 = vrot.lane.b32.xlu0 %v2312_v10, %s2219_s30 }
 0x579   :  { %1244 = vrot.lane.b32.xlu0 %v2310_v9, %s2222_s7 }
 0x57d   :  { %1407 = vrot.lane.b32.xlu0 %v2312_v10, %s2223_s8 }
 0x581   :  { %1485 = vrot.lane.b32.xlu0 %v2310_v9, %s2223_s8 }
 0x585   :  { %1405 = vrot.lane.b32.xlu0 %v2312_v10, %s2224_s9 }
 0x5ab   :  { %v665_v16 = vpop.xlane.xlu0 %664 }
 0x5ac   :  { %2094 = vrcp.f32 %v665_v16 }
 0x5af   :  { %v989_v20 = vpop.permute.xlu0 %988 }
 0x5b6   :  { %v2095_v18 = vpop.eup %2094 }
 0x5b7   :  { %v669_v19 = vmul.f32 %v2095_v18, %v2091_v3 }
 0x5b9   :  { %1987 = vmatmul.mubr.msk.f32.vlgmr.msra.gmra.mrb[10].mxu1 %vm155_vm2, %v669_v19 }
 0x5ba   :  { %2000 = vmatpush3.xpose.msk.msra.mxu1 %vm155_vm2, %v989_v20  ;;  %2001 = vmatprep.mubr.msk.f32.mxu1 %vm2214_vm1, %v2213_v8 }
 0x5bb   :  { %2004 = vmatprep.subr.mxu1 %v2213_v8 }
 0x5bd   :  { %2002 = vmatmul.mubr.msk.f32.vlgmr.msra.gmra.mrb[12].mxu1 %vm155_vm2, %v987_v5 }
 0x5be   :  { %2005 = vmatpush3.xpose.msk.msra.mxu1 %vm155_vm2, %v1067_v6  ;;  %2006 = vmatprep.mubr.msk.f32.mxu1 %vm2214_vm1, %v2213_v8 }
 0x5bf   :  { %2014 = vmatprep.subr.mxu1 %v2213_v8 }
 0x5c1   :  { %2007 = vmatmul.mubr.msk.f32.vlgmr.msra.gmra.mrb[14].mxu1 %vm155_vm2, %v1065_v7 }
 0x5c2   :  { %2016 = vmatprep.mubr.msk.f32.mxu1 %vm2214_vm1, %v2213_v8 }
 0x5ec   :  { %v662_v21 = vpop.xlane.xlu0 %661 }
 0x5ed   :  { %2096 = vrcp.f32 %v662_v21 }
 0x5f0   :  { %v671_v22 = vpop.permute.xlu0 %670 }
 0x5f1   :  { %1980 = vmatpush3.msra.mxu0 %v671_v22 }
 0x5f2   :  { %1989 = vmatprep.subr.mxu0 %v823_v26 }
 0x5f4   :  { %v1245_v23 = vpop.permute.xlu0 %1244 }
 0x5f5   :  { %2015 = vmatpush3.msra.mxu1 %v1245_v23 }
 0x5f6   :  { %2024 = vmatprep.subr.mxu1 %v2213_v8 }
 0x5f7   :  { %v2097_v24 = vpop.eup %2096 }
 0x5f8   :  { %v668_v25 = vmul.f32 %v2097_v24, %v2093_v14  ;;  %v1408_v56 = vpop.permute.xlu0 %1407 }
 0x5fa   :  { %1982 = vmatmul.mubr.msk.f32.vlgmr.msra.gmra.mrb[4].mxu0 %vm155_vm2, %v668_v25 }
 0x5fb   :  { %1990 = vmatpush3.msra.mxu0 %v823_v26 }
 0x5fc   :  { %1994 = vmatprep.subr.mxu0 %v487_v27  ;;  %v1486_v60 = vpop.permute.xlu0 %1485 }
 0x600   :  { %v1406_v62 = vpop.permute.xlu0 %1405 }
 0x68c   :  { %v818_v28 = vpop.f32.mrb[10].mxu1 }
 0x68d   :  { %v1988_v29 = vpop.f32.mrb[11].mxu1 }
 0x690   :  { %v1060_v30 = vpop.f32.mrb[12].mxu1 }
 0x691   :  { %v1142_v31 = vmul.f32 0.17677669, %v1060_v30  ;;  %v2003_v32 = vpop.f32.mrb[13].mxu1 }
 0x693   :  { %v1144_v33 = vsel %vm2328_vm3, %v1142_v31, -inf }
 0x694   :  { %v1138_v34 = vpop.f32.mrb[14].mxu1  ;;  %v1146_v35 = vsel %vm155_vm2, %v1144_v33, -inf }
 0x695   :  { %v1143_v36 = vmul.f32 0.17677669, %v1138_v34  ;;  %1147 = vmax.xlane.f32.xlu1 %v1146_v35  ;;  %v2008_v37 = vpop.f32.mrb[15].mxu1 }
 0x697   :  { %v1145_v38 = vsel %vm2328_vm3, %v1143_v36, -inf }
 0x698   :  { %v1149_v39 = vsel %vm155_vm2, %v1145_v38, -inf }
 0x699   :  { %1150 = vmax.xlane.f32.xlu1 %v1149_v39 }
 0x6cd   :  { %v742_v40 = vpop.f32.mrb[4].mxu0 }
 0x6ce   :  { %v1983_v41 = vpop.f32.mrb[5].mxu0  ;;  %1991 = vmatprep.mubr.msk.f32.mxu0 %vm155_vm2, %v742_v40 }
 0x6cf   :  { %1992 = vmatmul.mubr.msk.f32.vlgmr.msra.gmra.mrb[6].mxu0 %vm155_vm2, %v818_v28 }
 0x6d0   :  { %1996 = vmatprep.mubr.msk.f32.mxu0 %vm155_vm2, %v2364_v50  ;;  %1995 = vmatpush3.msra.mxu0 %v487_v27 }
 0x6d1   :  { %2009 = vmatprep.subr.mxu0 %v2213_v8 }
 0x6d7   :  { %1997 = vmatmul.mubr.msk.f32.vlgmr.msra.gmra.mrb[6].mxu0 %vm155_vm2, %v2366_v53 }
 0x6d8   :  { %2011 = vmatprep.mubr.msk.f32.mxu0 %vm2214_vm1, %v2213_v8 }
 0x722   :  { %v1148_v42 = vpop.xlane.xlu1 %1147 }
 0x723   :  { %v1152_v43 = vsub.f32 %v1144_v33, %v1148_v42 }
 0x725   :  { %v1154_v44 = vmul.f32 1.442695, %v1152_v43 }
 0x726   :  { %v1151_v45 = vpop.xlane.xlu1 %1150 }
 0x727   :  { %2098 = vpow2.f32 %v1154_v44  ;;  %v1153_v46 = vsub.f32 %v1145_v38, %v1151_v45 }
 0x729   :  { %v1156_v47 = vmul.f32 1.442695, %v1153_v46 }
 0x72b   :  { %2100 = vpow2.f32 %v1156_v47 }
 0x731   :  { %v2099_v48 = vpop.eup %2098 }
 0x732   :  { %v1158_v49 = vsel %vm155_vm2, %v2099_v48, 0.0 }
 0x733   :  { %1159 = vadd.xlane.f32.xlu1 %v1158_v49 }
 0x735   :  { %v2101_v50 = vpop.eup %2100 }
 0x736   :  { %v1161_v51 = vsel %vm155_vm2, %v2101_v50, 0.0 }
 0x737   :  { %1162 = vadd.xlane.f32.xlu1 %v1161_v51 }
 0x748   :  { %1168 = vrot.lane.b32.xlu1 %v2312_v10, %s2222_s7 }
 0x74c   :  { %1483 = vrot.lane.b32.xlu1 %v2310_v9, %s2224_s9 }
 0x7c0   :  { %v1160_v52 = vpop.xlane.xlu1 %1159 }
 0x7c1   :  { %2102 = vrcp.f32 %v1160_v52 }
 0x7c4   :  { %v1163_v53 = vpop.xlane.xlu1 %1162 }
 0x7c5   :  { %2104 = vrcp.f32 %v1163_v53 }
 0x7c8   :  { %v1169_v55 = vpop.permute.xlu1 %1168 }
 0x7c9   :  { %2010 = vmatpush3.msra.mxu0 %v1169_v55 }
 0x7ca   :  { %2019 = vmatprep.subr.mxu0 %v1321_v54 }
 0x7cb   :  { %v2103_v57 = vpop.eup %2102 }
 0x7cc   :  { %v1166_v58 = vmul.f32 %v2103_v57, %v2099_v48  ;;  %v1484_v3 = vpop.permute.xlu1 %1483 }
 0x7ce   :  { %2012 = vmatmul.mubr.msk.f32.vlgmr.msra.gmra.mrb[8].mxu0 %vm155_vm2, %v1166_v58 }
 0x7cf   :  { %v2105_v59 = vpop.eup %2104  ;;  %2020 = vmatpush3.msra.mxu0 %v1321_v54 }
 0x7d0   :  { %v1167_v61 = vmul.f32 %v2105_v59, %v2101_v50  ;;  %2029 = vmatprep.subr.mxu0 %v2213_v8 }
 0x7d2   :  { %2017 = vmatmul.mubr.msk.f32.vlgmr.msra.gmra.mrb[16].mxu1 %vm155_vm2, %v1167_v61 }
 0x7d3   :  { %2025 = vmatpush3.xpose.msk.msra.mxu1 %vm155_vm2, %v1408_v56  ;;  %2026 = vmatprep.mubr.msk.f32.mxu1 %vm2214_vm1, %v2213_v8 }
 0x7d4   :  { %2034 = vmatprep.subr.mxu1 %v2213_v8 }
 0x7d6   :  { %2027 = vmatmul.mubr.msk.f32.vlgmr.msra.gmra.mrb[18].mxu1 %vm155_vm2, %v1406_v62 }
 0x7d7   :  { %2036 = vmatprep.mubr.msk.f32.mxu1 %vm2214_vm1, %v2213_v8 }
 0x8a1   :  { %v1240_v63 = vpop.f32.mrb[8].mxu0 }
 0x8a2   :  { %v2013_v0 = vpop.f32.mrb[9].mxu0  ;;  %2021 = vmatprep.mubr.msk.f32.mxu0 %vm155_vm2, %v1240_v63 }
 0x8a5   :  { %v1316_v1 = vpop.f32.mrb[16].mxu1 }
 0x8a6   :  { %v2018_v2 = vpop.f32.mrb[17].mxu1  ;;  %2022 = vmatmul.mubr.msk.f32.vlgmr.msra.gmra.mrb[6].mxu0 %vm155_vm2, %v1316_v1 }
 0x8a7   :  { %2030 = vmatpush3.xpose.msk.msra.mxu0 %vm155_vm2, %v1486_v60  ;;  %2031 = vmatprep.mubr.msk.f32.mxu0 %vm2214_vm1, %v2213_v8 }
 0x8a8   :  { %2039 = vmatprep.subr.mxu0 %v2213_v8 }
 0x8a9   :  { %v1479_v4 = vpop.f32.mrb[18].mxu1 }
 0x8aa   :  { %v1561_v5 = vmul.f32 0.17677669, %v1479_v4  ;;  %v2028_v6 = vpop.f32.mrb[19].mxu1  ;;  %2032 = vmatmul.mubr.msk.f32.vlgmr.msra.gmra.mrb[10].mxu0 %vm155_vm2, %v1484_v3 }
 0x8ab   :  { %2041 = vmatprep.mubr.msk.f32.mxu0 %vm2214_vm1, %v2213_v8 }
 0x8ac   :  { %v1563_v7 = vsel %vm2328_vm3, %v1561_v5, -inf }
 0x8ad   :  { %v1565_v11 = vsel %vm155_vm2, %v1563_v7, -inf }
 0x8ae   :  { %1566 = vmax.xlane.f32.xlu0 %v1565_v11 }
 0x93b   :  { %v1567_v12 = vpop.xlane.xlu0 %1566 }
 0x93c   :  { %v1571_v13 = vsub.f32 %v1563_v7, %v1567_v12 }
 0x93e   :  { %v1573_v14 = vmul.f32 1.442695, %v1571_v13 }
 0x940   :  { %2106 = vpow2.f32 %v1573_v14 }
 0x94a   :  { %v2107_v15 = vpop.eup %2106 }
 0x94b   :  { %v1577_v16 = vsel %vm155_vm2, %v2107_v15, 0.0 }
 0x94c   :  { %1578 = vadd.xlane.f32.xlu0 %v1577_v16 }
 0x97d   :  { %v1557_v18 = vpop.f32.mrb[10].mxu0 }
 0x97e   :  { %v1562_v19 = vmul.f32 0.17677669, %v1557_v18  ;;  %v2033_v20 = vpop.f32.mrb[11].mxu0 }
 0x980   :  { %v1564_v8 = vsel %vm2328_vm3, %v1562_v19, -inf }
 0x981   :  { %v1568_v21 = vsel %vm155_vm2, %v1564_v8, -inf }
 0x982   :  { %1569 = vmax.xlane.f32.xlu1 %v1568_v21 }
 0x993   :  { %1587 = vrot.lane.b32.xlu1 %v2312_v10, %s2225_s10  ;;  %v1740_v10 = vld [vmem:[#allocation7 + $0x18] sm:$0xff] }
 0x9d9   :  { %v1579_v22 = vpop.xlane.xlu0 %1578 }
 0x9da   :  { %2108 = vrcp.f32 %v1579_v22 }
 0x9e4   :  { %v2109_v24 = vpop.eup %2108 }
 0x9e5   :  { %v1585_v27 = vmul.f32 %v2109_v24, %v2107_v15 }
 0xa0f   :  { %v1570_v23 = vpop.xlane.xlu1 %1569 }
 0xa10   :  { %v1572_v25 = vsub.f32 %v1564_v8, %v1570_v23 }
 0xa12   :  { %v1575_v26 = vmul.f32 1.442695, %v1572_v25 }
 0xa13   :  { %v1588_v28 = vpop.permute.xlu1 %1587 }
 0xa14   :  { %2110 = vpow2.f32 %v1575_v26  ;;  %2035 = vmatpush3.msra.mxu1 %v1588_v28 }
 0xa15   :  { %2037 = vmatmul.mubr.msk.f32.vlgmr.msra.gmra.mrb[20].mxu1 %vm155_vm2, %v1585_v27 }
 0xa1e   :  { %v2111_v17 = vpop.eup %2110 }
 0xa1f   :  { %v1580_v29 = vsel %vm155_vm2, %v2111_v17, 0.0 }
 0xa20   :  { %1581 = vadd.xlane.f32.xlu0 %v1580_v29 }
 0xa36   :  { %1663 = vrot.lane.b32.xlu0 %v2310_v9, %s2225_s10  ;;  %v1887_v9 = vld [vmem:[%s2481_s3] ss:$0 sm:$0xff] }
 0xaad   :  { %v1582_v30 = vpop.xlane.xlu0 %1581 }
 0xaae   :  { %2112 = vrcp.f32 %v1582_v30 }
 0xab1   :  { %v1664_v31 = vpop.permute.xlu0 %1663 }
 0xab2   :  { %2040 = vmatpush3.msra.mxu0 %v1664_v31 }
 0xab3   :  { %2044 = vmatprep.subr.mxu0 %v1740_v10 }
 0xab8   :  { %v2113_v32 = vpop.eup %2112 }
 0xab9   :  { %v1586_v33 = vmul.f32 %v2113_v32, %v2111_v17 }
 0xabb   :  { %2042 = vmatmul.mubr.msk.f32.vlgmr.msra.gmra.mrb[12].mxu0 %vm155_vm2, %v1586_v33 }
 0xabc   :  { %2045 = vmatpush3.msra.mxu0 %v1740_v10 }
 0xae8   :  { %v1659_v34 = vpop.f32.mrb[20].mxu1 }
 0xae9   :  { %v2038_v35 = vpop.f32.mrb[21].mxu1  ;;  %2046 = vmatprep.mubr.msk.f32.mxu0 %vm155_vm2, %v1659_v34 }
 0xb8e   :  { %v1735_v36 = vpop.f32.mrb[12].mxu0 }
 0xb8f   :  { %v2043_v37 = vpop.f32.mrb[13].mxu0  ;;  %2047 = vmatmul.mubr.msk.f32.vlgmr.msra.gmra.mrb[6].mxu0 %vm155_vm2, %v1735_v36 }
 0xc62   :  { %v2048_v38 = vpop.f32.mrb[6].mxu0 }
 0xc63   :  { %v1832_v39 = vadd.f32 %v2048_v38, %v1887_v9  ;;  %v1813_v40 = vpop.f32.mrb[7].mxu0 }
 0xc64   :  { %v1831_v41 = vadd.f32 %v1887_v9, %v1813_v40 }
 0xc65   :  { %1834 = vst [vmem:[#allocation8 + $0x8] sm:$0xff] %v1832_v39 }
 0xc66   :  { %1833 = vst [vmem:[#allocation8] sm:$0xff] %v1831_v41 }
 0xc67   :  { %2191 = shalt.err (!%p2188_p0)
}
 0xc68   :  { %s2192_s3 = scalar_lea.hbm %s2482_s4, 256 }
 0xc69   :  { %p2193_p1 = scmp.ne.s32.totalorder %s2482_s4, %s2192_s3  ;;  %p2196_p2 = scmp.lt.u32.totalorder %s2192_s3, %s2482_s4 }
 0xc6b   :  { %p2198_p3 = pnand %p2196_p2, %p2193_p1 }
 0xc6d   :  { %2201 = shalt.err (!%p2198_p3)
}
 0xc6e   :  { %1846 = dma.vmem_to_hbm [thread:$0]  %s1841_s13, 256, %s2482_s4, [#allocation4], %s2210_s27, %s2210_s27, %s2211_s28  }
 0xc6f   :  { %2206 = dma.done.wait [#allocation4], 256  }
 0xc70   :  { %2207 = vsyncadd [#allocation4], 4294967040 }
 0xc71   :  { %1850 = vsyncpa [#allocation3], 1 }
 0xc72   :  { %1851 = vsyncpa [#allocation6], 1 }
 0xc73   :  { %1852 = vsyncpa [#allocation4], 1 }

</bundles_post_ra>
